<compile_context>
chip_gen: v5e
topology: v5e:2x2
jax: 0.10.0
libtpu: 0.0.40
codegen_flags: <defaults>
</compile_context>

<pallas_src>
import jax
import jax.numpy as jnp
from jax.experimental import pallas as pl
from jax.experimental.pallas import tpu as pltpu


def lstm_block_kernel(x_ref, wih_ref, whh_ref, b_ref, h_ref, c_scr, gx_ring,
                      *, seq_len, chunk, gate_dtype):
    """One grid step = one (batch block, time block) tile.

    x_ref  : (Tb*Bb, D)        time-major rows, row = local_t*Bb + local_b
    wih_ref: (D, 4H)           W_ih^T (compute dtype)
    whh_ref: (H, 4H)           W_hh^T (compute dtype)
    b_ref  : (1, 4H)           b_ih + b_hh (f32)
    h_ref  : (Bb, H)           output / resident h state (f32)
    c_scr  : (Bb, H)           VMEM scratch, c state (f32)
    gx_ring: (2, chunk*Bb, 4H) VMEM ring buffer of gate pre-activations
    """
    f32 = jnp.float32
    t_blk = pl.program_id(1)
    rows, _ = x_ref.shape
    Bb, H = h_ref.shape
    Tb = rows // Bb
    CB = chunk * Bb                     # rows per projection chunk
    n_chunks = Tb // chunk              # static
    cdt = whh_ref.dtype                 # MXU compute dtype

    # h0 = c0 = 0 at the first time block of every batch block.
    @pl.when(t_blk == 0)
    def _():
        h_ref[...] = jnp.zeros_like(h_ref)
        c_scr[...] = jnp.zeros_like(c_scr)

    def project(row0):
        # (chunk*Bb, D) @ (D, 4H) with f32 accumulation, fused bias.
        xs = x_ref[pl.ds(row0, CB), :]
        g = jnp.dot(xs, wih_ref[...], preferred_element_type=f32) + b_ref[...]
        return g.astype(gx_ring.dtype)

    # Prologue: gate pre-activations for chunk 0 of this time block.
    gx_ring[0] = project(0)

    whh = whh_ref[...]

    def chunk_body(kc, carry):
        h, c = carry
        slot = kc & 1

        # Software pipeline: project the NEXT chunk into the other ring slot.
        # No data dependence on the recurrence below, so the MXU projection
        # overlaps the VPU/EUP-bound gate math.  (Clamped on the last chunk;
        # one redundant projection there is harmless.)
        if n_chunks > 1:
            nxt = jnp.minimum(kc + 1, n_chunks - 1)
            gx_ring[1 - slot] = project(pl.multiple_of(nxt * CB, CB))

        # Serial recurrence over the `chunk` timesteps of chunk kc.
        t_base = t_blk * Tb + kc * chunk
        for j in range(chunk):                      # static -> fully unrolled
            gx_j = gx_ring[slot, pl.ds(j * Bb, Bb), :].astype(f32)
            gates = gx_j + jnp.dot(h.astype(cdt), whh,
                                   preferred_element_type=f32)
            # PyTorch gate order [i, f, g, o]; nonlinearities in gate_dtype
            # (bf16 on the bf16 path -> 2x EUP throughput on v6e/v7x),
            # state update stays f32.
            g = gates.astype(gate_dtype)
            gi = jax.nn.sigmoid(g[:, 0 * H:1 * H]).astype(f32)
            gf = jax.nn.sigmoid(g[:, 1 * H:2 * H]).astype(f32)
            gg = jnp.tanh(g[:, 2 * H:3 * H]).astype(f32)
            go = jax.nn.sigmoid(g[:, 3 * H:4 * H]).astype(f32)
            c_new = gf * c + gi * gg
            h_new = go * jnp.tanh(c_new)
            valid = (t_base + j) < seq_len          # mask ragged/padded steps
            h = jnp.where(valid, h_new, h)
            c = jnp.where(valid, c_new, c)
        return h, c

    h, c = jax.lax.fori_loop(0, n_chunks, chunk_body,
                             (h_ref[...], c_scr[...]))

    # Spill state to VMEM only once per time block.
    h_ref[...] = h
    c_scr[...] = c


def _round_up(a, m):
    return (a + m - 1) // m * m


def lstm_classifier_forward(x, params, *, compute_dtype=jnp.bfloat16,
                            chunk=8, x_vmem_budget_bytes=4 << 20):
    """x: (B, T, D) float32 (batch_first, matching the PyTorch module)."""
    B, T, D = x.shape
    H = params["w_hh_t"].shape[0]
    f32 = jnp.float32
    cdt = compute_dtype
    item = jnp.dtype(cdt).itemsize

    # Sublane packing: bf16 packs 16 rows per vreg, f32 packs 8.
    sub = 16 if item < 4 else 8

    # Batch padding + optional 2-way split across batch blocks (v7x: 2 TCs).
    B_pad = _round_up(max(B, sub), sub)
    n_bblk = 2 if B_pad >= 32 else 1
    B_pad = _round_up(B_pad, sub * n_bblk)
    Bb = B_pad // n_bblk

    # Time block: multiple of `chunk`, sized so the double-buffered x block
    # stays within a small VMEM budget (the gx ring is only 2*chunk deep).
    T_chunks = _round_up(T, chunk)
    tb_mem = max(chunk,
                 (x_vmem_budget_bytes // (2 * Bb * D * item)) // chunk * chunk)
    Tb = min(T_chunks, tb_mem)
    n_tblk = pl.cdiv(T, Tb)
    T_pad = n_tblk * Tb

    # Layout x as (n_bblk, n_tblk, Tb*Bb, D), row = local_t*Bb + local_b.
    x_tm = jnp.transpose(x, (1, 0, 2))                          # (T, B, D)
    x_tm = jnp.pad(x_tm, ((0, T_pad - T), (0, B_pad - B), (0, 0)))
    x_tm = x_tm.reshape(n_tblk, Tb, n_bblk, Bb, D)
    x_tm = jnp.transpose(x_tm, (2, 0, 1, 3, 4))
    x_tm = x_tm.reshape(n_bblk, n_tblk, Tb * Bb, D).astype(cdt)

    w_ih = params["w_ih_t"].astype(cdt)                         # (D, 4H)
    w_hh = params["w_hh_t"].astype(cdt)                         # (H, 4H)
    bias = (params["b_ih"] + params["b_hh"]).reshape(1, 4 * H).astype(f32)

    # Reduced-precision path: bf16 gate nonlinearities + bf16 gx ring.
    gdt = cdt if item < 4 else f32
    gx_dt = cdt if item < 4 else f32

    # Explicit VMEM budget with headroom (v5e scoped default is only 16 MiB,
    # v7x physical is 64 MiB).
    need = (2 * Tb * Bb * D * item                              # x double-buffer
            + 2 * ((D + H) * 4 * H * item + 4 * H * 4)          # weights + bias
            + 2 * Bb * H * 4                                    # h output block
            + Bb * H * 4                                        # c scratch
            + 2 * chunk * Bb * 4 * H * jnp.dtype(gx_dt).itemsize)  # gx ring
    vmem_limit = int(min(64 << 20, max(32 << 20, 2 * need)))

    def kernel(x_ref, wih_ref, whh_ref, b_ref, h_ref, c_scr, gx_ring):
        lstm_block_kernel(x_ref, wih_ref, whh_ref, b_ref, h_ref, c_scr,
                          gx_ring, seq_len=T, chunk=chunk, gate_dtype=gdt)

    h_T = pl.pallas_call(
        kernel,
        out_shape=jax.ShapeDtypeStruct((B_pad, H), f32),
        grid_spec=pltpu.PrefetchScalarGridSpec(
            num_scalar_prefetch=0,
            grid=(n_bblk, n_tblk),
            in_specs=[
                # One (Tb*Bb, D) time-major slab per grid step.
                pl.BlockSpec((None, None, Tb * Bb, D),
                             lambda b, t: (b, t, 0, 0)),
                pl.BlockSpec((D, 4 * H), lambda b, t: (0, 0)),  # W_ih^T (const)
                pl.BlockSpec((H, 4 * H), lambda b, t: (0, 0)),  # W_hh^T (const)
                pl.BlockSpec((1, 4 * H), lambda b, t: (0, 0)),  # fused bias
            ],
            # Block index constant across t -> h stays resident over the
            # (serial) time axis; batch axis is independent / parallel.
            out_specs=pl.BlockSpec((Bb, H), lambda b, t: (b, 0)),
            scratch_shapes=[
                pltpu.VMEM((Bb, H), f32),                       # c state
                pltpu.VMEM((2, chunk * Bb, 4 * H), gx_dt),      # gx ring buffer
            ],
        ),
        compiler_params=pltpu.CompilerParams(
            dimension_semantics=("parallel", "arbitrary"),
            vmem_limit_bytes=vmem_limit),
    )(x_tm, w_ih, w_hh, bias)

    # FC head hoisted out of the recurrent kernel (tiny one-shot matmul).
    return h_T[:B] @ params["fc_w_t"] + params["fc_b"]


def init_params(key, input_size, hidden_size, num_classes):
    """Deterministic init mimicking PyTorch's U(-1/sqrt(H), 1/sqrt(H))."""
    k = 1.0 / jnp.sqrt(jnp.float32(hidden_size))
    keys = jax.random.split(key, 6)
    u = lambda kk, shape: jax.random.uniform(kk, shape, jnp.float32, -k, k)
    # Stored pre-transposed for the kernel (right-multiply form).
    return {
        "w_ih_t": u(keys[0], (input_size, 4 * hidden_size)),
        "w_hh_t": u(keys[1], (hidden_size, 4 * hidden_size)),
        "b_ih":   u(keys[2], (4 * hidden_size,)),
        "b_hh":   u(keys[3], (4 * hidden_size,)),
        "fc_w_t": u(keys[4], (hidden_size, num_classes)),
        "fc_b":   u(keys[5], (num_classes,)),
    }


def reference_forward(x, params):
    """Pure-JAX f32 reference replicating nn.LSTM (1 layer) + Linear."""
    B, T, D = x.shape
    H = params["w_hh_t"].shape[0]
    bias = params["b_ih"] + params["b_hh"]

    def step(carry, x_t):
        h, c = carry
        gates = x_t @ params["w_ih_t"] + h @ params["w_hh_t"] + bias
        i = jax.nn.sigmoid(gates[:, 0 * H:1 * H])
        f = jax.nn.sigmoid(gates[:, 1 * H:2 * H])
        g = jnp.tanh(gates[:, 2 * H:3 * H])
        o = jax.nn.sigmoid(gates[:, 3 * H:4 * H])
        c = f * c + i * g
        h = o * jnp.tanh(c)
        return (h, c), None

    h0 = jnp.zeros((B, H), jnp.float32)
    c0 = jnp.zeros((B, H), jnp.float32)
    (hT, _), _ = jax.lax.scan(step, (h0, c0), jnp.transpose(x, (1, 0, 2)))
    return hT @ params["fc_w_t"] + params["fc_b"]


if __name__ == "__main__":
    # Small shapes consistent with the module: input_size stays 35 (module
    # constant), hidden/seq/batch shrunk for a quick test.
    batch, seq_len = 2, 8
    input_size, hidden_size, num_classes = 35, 32, 4

    key = jax.random.PRNGKey(0)
    kx, kp = jax.random.split(key)
    x = jax.random.normal(kx, (batch, seq_len, input_size), jnp.float32)
    params = init_params(kp, input_size, hidden_size, num_classes)

    ref = reference_forward(x, params)

    # f32 path: exact check against the pure-JAX reference.
    out_f32 = jax.block_until_ready(
        lstm_classifier_forward(x, params, compute_dtype=jnp.float32))
    assert out_f32.shape == (batch, num_classes)
    assert jnp.allclose(out_f32, ref, atol=1e-4, rtol=1e-4), (out_f32, ref)

    # bf16 default path: bf16 MXU operands + bf16 gate nonlinearities,
    # f32 accumulation and f32 h/c state (reduced-precision, looser tol).
    out_bf16 = jax.block_until_ready(lstm_classifier_forward(x, params))
    assert out_bf16.shape == (batch, num_classes)
    assert jnp.allclose(out_bf16, ref, atol=1e-1, rtol=1e-1), (out_bf16, ref)

    # Ragged T (not a multiple of the chunk/time block): exercises the
    # cdiv grid + masked tail path and the 2-slot projection ring (n_chunks>1).
    x2 = jax.random.normal(kx, (batch, 11, input_size), jnp.float32)
    ref2 = reference_forward(x2, params)
    out2 = jax.block_until_ready(
        lstm_classifier_forward(x2, params, compute_dtype=jnp.float32))
    assert jnp.allclose(out2, ref2, atol=1e-4, rtol=1e-4), (out2, ref2)

    print("KERNEL_OK")
</pallas_src>

<mosaic_0001>
module attributes {stable_mosaic.version = 11 : i64} {
  func.func @kernel(%arg0: i32, %arg1: i32, %arg2: memref<1x1x64x35xf32, #tpu.memory_space<vmem>>, %arg3: memref<35x128xf32, #tpu.memory_space<vmem>>, %arg4: memref<32x128xf32, #tpu.memory_space<vmem>>, %arg5: memref<1x128xf32, #tpu.memory_space<vmem>>, %arg6: memref<8x32xf32, #tpu.memory_space<vmem>>, %arg7: memref<8x32xf32, #tpu.memory_space<vmem>>, %arg8: memref<2x64x128xf32, #tpu.memory_space<vmem>>) attributes {dimension_semantics = [#tpu.dimension_semantics<parallel>, #tpu.dimension_semantics<arbitrary>], iteration_bounds = array<i64: 1, 1>, scalar_prefetch = 0 : i64, scratch_operands = 2 : i64, tpu.core_type = #tpu.core_type<tc>, window_params = [{transform_indices = @transform_0, window_bounds = array<i64: 1, 1, 64, 35>}, {pipeline_mode = #tpu.pipeline_mode<synchronous>, transform_indices = @transform_1, window_bounds = array<i64: 35, 128>}, {pipeline_mode = #tpu.pipeline_mode<synchronous>, transform_indices = @transform_2, window_bounds = array<i64: 32, 128>}, {pipeline_mode = #tpu.pipeline_mode<synchronous>, transform_indices = @transform_3, window_bounds = array<i64: 1, 128>}, {transform_indices = @transform_4, window_bounds = array<i64: 8, 32>}]} {
    %c0_i32 = arith.constant 0 : i32
    %0 = arith.cmpi eq, %arg1, %c0_i32 : i32
    %1 = arith.extui %0 : i1 to i32
    %c0_i32_0 = arith.constant 0 : i32
    %2 = arith.cmpi ne, %1, %c0_i32_0 : i32
    scf.if %2 {
      %cst_75 = arith.constant 0.000000e+00 : f32
      %294 = vector.broadcast %cst_75 : f32 to vector<8x32xf32>
      %c0_76 = arith.constant 0 : index
      %c0_77 = arith.constant 0 : index
      %295 = vector.load %arg6[%c0_76, %c0_77] : memref<8x32xf32, #tpu.memory_space<vmem>>, vector<8x32xf32>
      tpu.vector_store %arg6[%c0_76, %c0_77], %294 {strides = array<i32>} : memref<8x32xf32, #tpu.memory_space<vmem>>, vector<8x32xf32>,
      %cst_78 = arith.constant 0.000000e+00 : f32
      %296 = vector.broadcast %cst_78 : f32 to vector<8x32xf32>
      %c0_79 = arith.constant 0 : index
      %c0_80 = arith.constant 0 : index
      %297 = vector.load %arg7[%c0_79, %c0_80] : memref<8x32xf32, #tpu.memory_space<vmem>>, vector<8x32xf32>
      tpu.vector_store %arg7[%c0_79, %c0_80], %296 {strides = array<i32>} : memref<8x32xf32, #tpu.memory_space<vmem>>, vector<8x32xf32>,
    } else {
    }
    %c0 = arith.constant 0 : index
    %c0_1 = arith.constant 0 : index
    %c0_2 = arith.constant 0 : index
    %c0_3 = arith.constant 0 : index
    %3 = vector.load %arg2[%c0, %c0_1, %c0_2, %c0_3] : memref<1x1x64x35xf32, #tpu.memory_space<vmem>>, vector<1x1x64x35xf32>
    %4 = vector.shape_cast %3 : vector<1x1x64x35xf32> to vector<64x35xf32>
    %c0_4 = arith.constant 0 : index
    %c0_5 = arith.constant 0 : index
    %5 = vector.load %arg3[%c0_4, %c0_5] : memref<35x128xf32, #tpu.memory_space<vmem>>, vector<35x128xf32>
    %cst = arith.constant dense<0.000000e+00> : vector<64x128xf32>
    %6 = tpu.matmul %4, %5, %cst {dimension_numbers = #tpu.dot_dimension_numbers<[1], [0], [0], [1], [0, 0, 1, 1], [], []>} : vector<64x35xf32>, vector<35x128xf32>, vector<64x128xf32> -> vector<64x128xf32>
    %c0_6 = arith.constant 0 : index
    %c0_7 = arith.constant 0 : index
    %7 = vector.load %arg5[%c0_6, %c0_7] : memref<1x128xf32, #tpu.memory_space<vmem>>, vector<1x128xf32>
    %8 = vector.broadcast %7 : vector<1x128xf32> to vector<64x128xf32>
    %9 = arith.addf %6, %8 : vector<64x128xf32>
    %c0_8 = arith.constant 0 : index
    %c0_9 = arith.constant 0 : index
    %c0_10 = arith.constant 0 : index
    %10 = vector.load %arg8[%c0_8, %c0_9, %c0_10] : memref<2x64x128xf32, #tpu.memory_space<vmem>>, vector<1x64x128xf32>
    %11 = vector.shape_cast %10 : vector<1x64x128xf32> to vector<64x128xf32>
    %12 = vector.shape_cast %9 : vector<64x128xf32> to vector<1x64x128xf32>
    tpu.vector_store %arg8[%c0_8, %c0_9, %c0_10], %12 {strides = array<i32>} : memref<2x64x128xf32, #tpu.memory_space<vmem>>, vector<1x64x128xf32>,
    %c0_11 = arith.constant 0 : index
    %c0_12 = arith.constant 0 : index
    %13 = vector.load %arg4[%c0_11, %c0_12] : memref<32x128xf32, #tpu.memory_space<vmem>>, vector<32x128xf32>
    %c0_13 = arith.constant 0 : index
    %c0_14 = arith.constant 0 : index
    %14 = vector.load %arg6[%c0_13, %c0_14] : memref<8x32xf32, #tpu.memory_space<vmem>>, vector<8x32xf32>
    %c0_15 = arith.constant 0 : index
    %c0_16 = arith.constant 0 : index
    %15 = vector.load %arg7[%c0_15, %c0_16] : memref<8x32xf32, #tpu.memory_space<vmem>>, vector<8x32xf32>
    %c0_i32_17 = arith.constant 0 : i32
    %c1_i32 = arith.constant 1 : i32
    %16 = arith.andi %c0_i32_17, %c1_i32 : i32
    %c8_i32 = arith.constant 8 : i32
    %17 = arith.muli %arg1, %c8_i32 : i32
    %c8_i32_18 = arith.constant 8 : i32
    %18 = arith.muli %c0_i32_17, %c8_i32_18 : i32
    %19 = arith.addi %17, %18 : i32
    %20 = arith.index_cast %16 : i32 to index
    %c0_19 = arith.constant 0 : index
    %c0_20 = arith.constant 0 : index
    %21 = vector.load %arg8[%20, %c0_19, %c0_20] : memref<2x64x128xf32, #tpu.memory_space<vmem>>, vector<1x8x128xf32>
    %22 = vector.shape_cast %21 : vector<1x8x128xf32> to vector<8x128xf32>
    %cst_21 = arith.constant dense<0.000000e+00> : vector<8x128xf32>
    %23 = tpu.matmul %14, %13, %cst_21 {dimension_numbers = #tpu.dot_dimension_numbers<[1], [0], [0], [1], [0, 0, 1, 1], [], []>} : vector<8x32xf32>, vector<32x128xf32>, vector<8x128xf32> -> vector<8x128xf32>
    %24 = arith.addf %22, %23 : vector<8x128xf32>
    %25 = vector.extract_strided_slice %24 {offsets = [0, 0], sizes = [8, 32], strides = [1, 1]} : vector<8x128xf32> to vector<8x32xf32>
    %26 = arith.negf %25 : vector<8x32xf32>
    %27 = math.exp %26 : vector<8x32xf32>
    %cst_22 = arith.constant 1.000000e+00 : f32
    %28 = vector.broadcast %cst_22 : f32 to vector<8x32xf32>
    %29 = arith.addf %28, %27 : vector<8x32xf32>
    %30 = arith.divf %28, %29 : vector<8x32xf32>
    %31 = vector.extract_strided_slice %24 {offsets = [0, 32], sizes = [8, 32], strides = [1, 1]} : vector<8x128xf32> to vector<8x32xf32>
    %32 = arith.negf %31 : vector<8x32xf32>
    %33 = math.exp %32 : vector<8x32xf32>
    %cst_23 = arith.constant 1.000000e+00 : f32
    %34 = vector.broadcast %cst_23 : f32 to vector<8x32xf32>
    %35 = arith.addf %34, %33 : vector<8x32xf32>
    %36 = arith.divf %34, %35 : vector<8x32xf32>
    %37 = vector.extract_strided_slice %24 {offsets = [0, 64], sizes = [8, 32], strides = [1, 1]} : vector<8x128xf32> to vector<8x32xf32>
    %38 = math.tanh %37 : vector<8x32xf32>
    %39 = vector.extract_strided_slice %24 {offsets = [0, 96], sizes = [8, 32], strides = [1, 1]} : vector<8x128xf32> to vector<8x32xf32>
    %40 = arith.negf %39 : vector<8x32xf32>
    %41 = math.exp %40 : vector<8x32xf32>
    %cst_24 = arith.constant 1.000000e+00 : f32
    %42 = vector.broadcast %cst_24 : f32 to vector<8x32xf32>
    %43 = arith.addf %42, %41 : vector<8x32xf32>
    %44 = arith.divf %42, %43 : vector<8x32xf32>
    %45 = arith.mulf %36, %15 : vector<8x32xf32>
    %46 = arith.mulf %30, %38 : vector<8x32xf32>
    %47 = arith.addf %45, %46 : vector<8x32xf32>
    %48 = math.tanh %47 : vector<8x32xf32>
    %49 = arith.mulf %44, %48 : vector<8x32xf32>
    %c0_i32_25 = arith.constant 0 : i32
    %50 = arith.addi %19, %c0_i32_25 : i32
    %c8_i32_26 = arith.constant 8 : i32
    %51 = arith.cmpi slt, %50, %c8_i32_26 : i32
    %52 = arith.select %51, %49, %14 : vector<8x32xf32>
    %53 = arith.select %51, %47, %15 : vector<8x32xf32>
    %54 = arith.index_cast %16 : i32 to index
    %c8 = arith.constant 8 : index
    %c0_27 = arith.constant 0 : index
    %55 = vector.load %arg8[%54, %c8, %c0_27] : memref<2x64x128xf32, #tpu.memory_space<vmem>>, vector<1x8x128xf32>
    %56 = vector.shape_cast %55 : vector<1x8x128xf32> to vector<8x128xf32>
    %cst_28 = arith.constant dense<0.000000e+00> : vector<8x128xf32>
    %57 = tpu.matmul %52, %13, %cst_28 {dimension_numbers = #tpu.dot_dimension_numbers<[1], [0], [0], [1], [0, 0, 1, 1], [], []>} : vector<8x32xf32>, vector<32x128xf32>, vector<8x128xf32> -> vector<8x128xf32>
    %58 = arith.addf %56, %57 : vector<8x128xf32>
    %59 = vector.extract_strided_slice %58 {offsets = [0, 0], sizes = [8, 32], strides = [1, 1]} : vector<8x128xf32> to vector<8x32xf32>
    %60 = arith.negf %59 : vector<8x32xf32>
    %61 = math.exp %60 : vector<8x32xf32>
    %cst_29 = arith.constant 1.000000e+00 : f32
    %62 = vector.broadcast %cst_29 : f32 to vector<8x32xf32>
    %63 = arith.addf %62, %61 : vector<8x32xf32>
    %64 = arith.divf %62, %63 : vector<8x32xf32>
    %65 = vector.extract_strided_slice %58 {offsets = [0, 32], sizes = [8, 32], strides = [1, 1]} : vector<8x128xf32> to vector<8x32xf32>
    %66 = arith.negf %65 : vector<8x32xf32>
    %67 = math.exp %66 : vector<8x32xf32>
    %cst_30 = arith.constant 1.000000e+00 : f32
    %68 = vector.broadcast %cst_30 : f32 to vector<8x32xf32>
    %69 = arith.addf %68, %67 : vector<8x32xf32>
    %70 = arith.divf %68, %69 : vector<8x32xf32>
    %71 = vector.extract_strided_slice %58 {offsets = [0, 64], sizes = [8, 32], strides = [1, 1]} : vector<8x128xf32> to vector<8x32xf32>
    %72 = math.tanh %71 : vector<8x32xf32>
    %73 = vector.extract_strided_slice %58 {offsets = [0, 96], sizes = [8, 32], strides = [1, 1]} : vector<8x128xf32> to vector<8x32xf32>
    %74 = arith.negf %73 : vector<8x32xf32>
    %75 = math.exp %74 : vector<8x32xf32>
    %cst_31 = arith.constant 1.000000e+00 : f32
    %76 = vector.broadcast %cst_31 : f32 to vector<8x32xf32>
    %77 = arith.addf %76, %75 : vector<8x32xf32>
    %78 = arith.divf %76, %77 : vector<8x32xf32>
    %79 = arith.mulf %70, %53 : vector<8x32xf32>
    %80 = arith.mulf %64, %72 : vector<8x32xf32>
    %81 = arith.addf %79, %80 : vector<8x32xf32>
    %82 = math.tanh %81 : vector<8x32xf32>
    %83 = arith.mulf %78, %82 : vector<8x32xf32>
    %c1_i32_32 = arith.constant 1 : i32
    %84 = arith.addi %19, %c1_i32_32 : i32
    %c8_i32_33 = arith.constant 8 : i32
    %85 = arith.cmpi slt, %84, %c8_i32_33 : i32
    %86 = arith.select %85, %83, %52 : vector<8x32xf32>
    %87 = arith.select %85, %81, %53 : vector<8x32xf32>
    %88 = arith.index_cast %16 : i32 to index
    %c16 = arith.constant 16 : index
    %c0_34 = arith.constant 0 : index
    %89 = vector.load %arg8[%88, %c16, %c0_34] : memref<2x64x128xf32, #tpu.memory_space<vmem>>, vector<1x8x128xf32>
    %90 = vector.shape_cast %89 : vector<1x8x128xf32> to vector<8x128xf32>
    %cst_35 = arith.constant dense<0.000000e+00> : vector<8x128xf32>
    %91 = tpu.matmul %86, %13, %cst_35 {dimension_numbers = #tpu.dot_dimension_numbers<[1], [0], [0], [1], [0, 0, 1, 1], [], []>} : vector<8x32xf32>, vector<32x128xf32>, vector<8x128xf32> -> vector<8x128xf32>
    %92 = arith.addf %90, %91 : vector<8x128xf32>
    %93 = vector.extract_strided_slice %92 {offsets = [0, 0], sizes = [8, 32], strides = [1, 1]} : vector<8x128xf32> to vector<8x32xf32>
    %94 = arith.negf %93 : vector<8x32xf32>
    %95 = math.exp %94 : vector<8x32xf32>
    %cst_36 = arith.constant 1.000000e+00 : f32
    %96 = vector.broadcast %cst_36 : f32 to vector<8x32xf32>
    %97 = arith.addf %96, %95 : vector<8x32xf32>
    %98 = arith.divf %96, %97 : vector<8x32xf32>
    %99 = vector.extract_strided_slice %92 {offsets = [0, 32], sizes = [8, 32], strides = [1, 1]} : vector<8x128xf32> to vector<8x32xf32>
    %100 = arith.negf %99 : vector<8x32xf32>
    %101 = math.exp %100 : vector<8x32xf32>
    %cst_37 = arith.constant 1.000000e+00 : f32
    %102 = vector.broadcast %cst_37 : f32 to vector<8x32xf32>
    %103 = arith.addf %102, %101 : vector<8x32xf32>
    %104 = arith.divf %102, %103 : vector<8x32xf32>
    %105 = vector.extract_strided_slice %92 {offsets = [0, 64], sizes = [8, 32], strides = [1, 1]} : vector<8x128xf32> to vector<8x32xf32>
    %106 = math.tanh %105 : vector<8x32xf32>
    %107 = vector.extract_strided_slice %92 {offsets = [0, 96], sizes = [8, 32], strides = [1, 1]} : vector<8x128xf32> to vector<8x32xf32>
    %108 = arith.negf %107 : vector<8x32xf32>
    %109 = math.exp %108 : vector<8x32xf32>
    %cst_38 = arith.constant 1.000000e+00 : f32
    %110 = vector.broadcast %cst_38 : f32 to vector<8x32xf32>
    %111 = arith.addf %110, %109 : vector<8x32xf32>
    %112 = arith.divf %110, %111 : vector<8x32xf32>
    %113 = arith.mulf %104, %87 : vector<8x32xf32>
    %114 = arith.mulf %98, %106 : vector<8x32xf32>
    %115 = arith.addf %113, %114 : vector<8x32xf32>
    %116 = math.tanh %115 : vector<8x32xf32>
    %117 = arith.mulf %112, %116 : vector<8x32xf32>
    %c2_i32 = arith.constant 2 : i32
    %118 = arith.addi %19, %c2_i32 : i32
    %c8_i32_39 = arith.constant 8 : i32
    %119 = arith.cmpi slt, %118, %c8_i32_39 : i32
    %120 = arith.select %119, %117, %86 : vector<8x32xf32>
    %121 = arith.select %119, %115, %87 : vector<8x32xf32>
    %122 = arith.index_cast %16 : i32 to index
    %c24 = arith.constant 24 : index
    %c0_40 = arith.constant 0 : index
    %123 = vector.load %arg8[%122, %c24, %c0_40] : memref<2x64x128xf32, #tpu.memory_space<vmem>>, vector<1x8x128xf32>
    %124 = vector.shape_cast %123 : vector<1x8x128xf32> to vector<8x128xf32>
    %cst_41 = arith.constant dense<0.000000e+00> : vector<8x128xf32>
    %125 = tpu.matmul %120, %13, %cst_41 {dimension_numbers = #tpu.dot_dimension_numbers<[1], [0], [0], [1], [0, 0, 1, 1], [], []>} : vector<8x32xf32>, vector<32x128xf32>, vector<8x128xf32> -> vector<8x128xf32>
    %126 = arith.addf %124, %125 : vector<8x128xf32>
    %127 = vector.extract_strided_slice %126 {offsets = [0, 0], sizes = [8, 32], strides = [1, 1]} : vector<8x128xf32> to vector<8x32xf32>
    %128 = arith.negf %127 : vector<8x32xf32>
    %129 = math.exp %128 : vector<8x32xf32>
    %cst_42 = arith.constant 1.000000e+00 : f32
    %130 = vector.broadcast %cst_42 : f32 to vector<8x32xf32>
    %131 = arith.addf %130, %129 : vector<8x32xf32>
    %132 = arith.divf %130, %131 : vector<8x32xf32>
    %133 = vector.extract_strided_slice %126 {offsets = [0, 32], sizes = [8, 32], strides = [1, 1]} : vector<8x128xf32> to vector<8x32xf32>
    %134 = arith.negf %133 : vector<8x32xf32>
    %135 = math.exp %134 : vector<8x32xf32>
    %cst_43 = arith.constant 1.000000e+00 : f32
    %136 = vector.broadcast %cst_43 : f32 to vector<8x32xf32>
    %137 = arith.addf %136, %135 : vector<8x32xf32>
    %138 = arith.divf %136, %137 : vector<8x32xf32>
    %139 = vector.extract_strided_slice %126 {offsets = [0, 64], sizes = [8, 32], strides = [1, 1]} : vector<8x128xf32> to vector<8x32xf32>
    %140 = math.tanh %139 : vector<8x32xf32>
    %141 = vector.extract_strided_slice %126 {offsets = [0, 96], sizes = [8, 32], strides = [1, 1]} : vector<8x128xf32> to vector<8x32xf32>
    %142 = arith.negf %141 : vector<8x32xf32>
    %143 = math.exp %142 : vector<8x32xf32>
    %cst_44 = arith.constant 1.000000e+00 : f32
    %144 = vector.broadcast %cst_44 : f32 to vector<8x32xf32>
    %145 = arith.addf %144, %143 : vector<8x32xf32>
    %146 = arith.divf %144, %145 : vector<8x32xf32>
    %147 = arith.mulf %138, %121 : vector<8x32xf32>
    %148 = arith.mulf %132, %140 : vector<8x32xf32>
    %149 = arith.addf %147, %148 : vector<8x32xf32>
    %150 = math.tanh %149 : vector<8x32xf32>
    %151 = arith.mulf %146, %150 : vector<8x32xf32>
    %c3_i32 = arith.constant 3 : i32
    %152 = arith.addi %19, %c3_i32 : i32
    %c8_i32_45 = arith.constant 8 : i32
    %153 = arith.cmpi slt, %152, %c8_i32_45 : i32
    %154 = arith.select %153, %151, %120 : vector<8x32xf32>
    %155 = arith.select %153, %149, %121 : vector<8x32xf32>
    %156 = arith.index_cast %16 : i32 to index
    %c32 = arith.constant 32 : index
    %c0_46 = arith.constant 0 : index
    %157 = vector.load %arg8[%156, %c32, %c0_46] : memref<2x64x128xf32, #tpu.memory_space<vmem>>, vector<1x8x128xf32>
    %158 = vector.shape_cast %157 : vector<1x8x128xf32> to vector<8x128xf32>
    %cst_47 = arith.constant dense<0.000000e+00> : vector<8x128xf32>
    %159 = tpu.matmul %154, %13, %cst_47 {dimension_numbers = #tpu.dot_dimension_numbers<[1], [0], [0], [1], [0, 0, 1, 1], [], []>} : vector<8x32xf32>, vector<32x128xf32>, vector<8x128xf32> -> vector<8x128xf32>
    %160 = arith.addf %158, %159 : vector<8x128xf32>
    %161 = vector.extract_strided_slice %160 {offsets = [0, 0], sizes = [8, 32], strides = [1, 1]} : vector<8x128xf32> to vector<8x32xf32>
    %162 = arith.negf %161 : vector<8x32xf32>
    %163 = math.exp %162 : vector<8x32xf32>
    %cst_48 = arith.constant 1.000000e+00 : f32
    %164 = vector.broadcast %cst_48 : f32 to vector<8x32xf32>
    %165 = arith.addf %164, %163 : vector<8x32xf32>
    %166 = arith.divf %164, %165 : vector<8x32xf32>
    %167 = vector.extract_strided_slice %160 {offsets = [0, 32], sizes = [8, 32], strides = [1, 1]} : vector<8x128xf32> to vector<8x32xf32>
    %168 = arith.negf %167 : vector<8x32xf32>
    %169 = math.exp %168 : vector<8x32xf32>
    %cst_49 = arith.constant 1.000000e+00 : f32
    %170 = vector.broadcast %cst_49 : f32 to vector<8x32xf32>
    %171 = arith.addf %170, %169 : vector<8x32xf32>
    %172 = arith.divf %170, %171 : vector<8x32xf32>
    %173 = vector.extract_strided_slice %160 {offsets = [0, 64], sizes = [8, 32], strides = [1, 1]} : vector<8x128xf32> to vector<8x32xf32>
    %174 = math.tanh %173 : vector<8x32xf32>
    %175 = vector.extract_strided_slice %160 {offsets = [0, 96], sizes = [8, 32], strides = [1, 1]} : vector<8x128xf32> to vector<8x32xf32>
    %176 = arith.negf %175 : vector<8x32xf32>
    %177 = math.exp %176 : vector<8x32xf32>
    %cst_50 = arith.constant 1.000000e+00 : f32
    %178 = vector.broadcast %cst_50 : f32 to vector<8x32xf32>
    %179 = arith.addf %178, %177 : vector<8x32xf32>
    %180 = arith.divf %178, %179 : vector<8x32xf32>
    %181 = arith.mulf %172, %155 : vector<8x32xf32>
    %182 = arith.mulf %166, %174 : vector<8x32xf32>
    %183 = arith.addf %181, %182 : vector<8x32xf32>
    %184 = math.tanh %183 : vector<8x32xf32>
    %185 = arith.mulf %180, %184 : vector<8x32xf32>
    %c4_i32 = arith.constant 4 : i32
    %186 = arith.addi %19, %c4_i32 : i32
    %c8_i32_51 = arith.constant 8 : i32
    %187 = arith.cmpi slt, %186, %c8_i32_51 : i32
    %188 = arith.select %187, %185, %154 : vector<8x32xf32>
    %189 = arith.select %187, %183, %155 : vector<8x32xf32>
    %190 = arith.index_cast %16 : i32 to index
    %c40 = arith.constant 40 : index
    %c0_52 = arith.constant 0 : index
    %191 = vector.load %arg8[%190, %c40, %c0_52] : memref<2x64x128xf32, #tpu.memory_space<vmem>>, vector<1x8x128xf32>
    %192 = vector.shape_cast %191 : vector<1x8x128xf32> to vector<8x128xf32>
    %cst_53 = arith.constant dense<0.000000e+00> : vector<8x128xf32>
    %193 = tpu.matmul %188, %13, %cst_53 {dimension_numbers = #tpu.dot_dimension_numbers<[1], [0], [0], [1], [0, 0, 1, 1], [], []>} : vector<8x32xf32>, vector<32x128xf32>, vector<8x128xf32> -> vector<8x128xf32>
    %194 = arith.addf %192, %193 : vector<8x128xf32>
    %195 = vector.extract_strided_slice %194 {offsets = [0, 0], sizes = [8, 32], strides = [1, 1]} : vector<8x128xf32> to vector<8x32xf32>
    %196 = arith.negf %195 : vector<8x32xf32>
    %197 = math.exp %196 : vector<8x32xf32>
    %cst_54 = arith.constant 1.000000e+00 : f32
    %198 = vector.broadcast %cst_54 : f32 to vector<8x32xf32>
    %199 = arith.addf %198, %197 : vector<8x32xf32>
    %200 = arith.divf %198, %199 : vector<8x32xf32>
    %201 = vector.extract_strided_slice %194 {offsets = [0, 32], sizes = [8, 32], strides = [1, 1]} : vector<8x128xf32> to vector<8x32xf32>
    %202 = arith.negf %201 : vector<8x32xf32>
    %203 = math.exp %202 : vector<8x32xf32>
    %cst_55 = arith.constant 1.000000e+00 : f32
    %204 = vector.broadcast %cst_55 : f32 to vector<8x32xf32>
    %205 = arith.addf %204, %203 : vector<8x32xf32>
    %206 = arith.divf %204, %205 : vector<8x32xf32>
    %207 = vector.extract_strided_slice %194 {offsets = [0, 64], sizes = [8, 32], strides = [1, 1]} : vector<8x128xf32> to vector<8x32xf32>
    %208 = math.tanh %207 : vector<8x32xf32>
    %209 = vector.extract_strided_slice %194 {offsets = [0, 96], sizes = [8, 32], strides = [1, 1]} : vector<8x128xf32> to vector<8x32xf32>
    %210 = arith.negf %209 : vector<8x32xf32>
    %211 = math.exp %210 : vector<8x32xf32>
    %cst_56 = arith.constant 1.000000e+00 : f32
    %212 = vector.broadcast %cst_56 : f32 to vector<8x32xf32>
    %213 = arith.addf %212, %211 : vector<8x32xf32>
    %214 = arith.divf %212, %213 : vector<8x32xf32>
    %215 = arith.mulf %206, %189 : vector<8x32xf32>
    %216 = arith.mulf %200, %208 : vector<8x32xf32>
    %217 = arith.addf %215, %216 : vector<8x32xf32>
    %218 = math.tanh %217 : vector<8x32xf32>
    %219 = arith.mulf %214, %218 : vector<8x32xf32>
    %c5_i32 = arith.constant 5 : i32
    %220 = arith.addi %19, %c5_i32 : i32
    %c8_i32_57 = arith.constant 8 : i32
    %221 = arith.cmpi slt, %220, %c8_i32_57 : i32
    %222 = arith.select %221, %219, %188 : vector<8x32xf32>
    %223 = arith.select %221, %217, %189 : vector<8x32xf32>
    %224 = arith.index_cast %16 : i32 to index
    %c48 = arith.constant 48 : index
    %c0_58 = arith.constant 0 : index
    %225 = vector.load %arg8[%224, %c48, %c0_58] : memref<2x64x128xf32, #tpu.memory_space<vmem>>, vector<1x8x128xf32>
    %226 = vector.shape_cast %225 : vector<1x8x128xf32> to vector<8x128xf32>
    %cst_59 = arith.constant dense<0.000000e+00> : vector<8x128xf32>
    %227 = tpu.matmul %222, %13, %cst_59 {dimension_numbers = #tpu.dot_dimension_numbers<[1], [0], [0], [1], [0, 0, 1, 1], [], []>} : vector<8x32xf32>, vector<32x128xf32>, vector<8x128xf32> -> vector<8x128xf32>
    %228 = arith.addf %226, %227 : vector<8x128xf32>
    %229 = vector.extract_strided_slice %228 {offsets = [0, 0], sizes = [8, 32], strides = [1, 1]} : vector<8x128xf32> to vector<8x32xf32>
    %230 = arith.negf %229 : vector<8x32xf32>
    %231 = math.exp %230 : vector<8x32xf32>
    %cst_60 = arith.constant 1.000000e+00 : f32
    %232 = vector.broadcast %cst_60 : f32 to vector<8x32xf32>
    %233 = arith.addf %232, %231 : vector<8x32xf32>
    %234 = arith.divf %232, %233 : vector<8x32xf32>
    %235 = vector.extract_strided_slice %228 {offsets = [0, 32], sizes = [8, 32], strides = [1, 1]} : vector<8x128xf32> to vector<8x32xf32>
    %236 = arith.negf %235 : vector<8x32xf32>
    %237 = math.exp %236 : vector<8x32xf32>
    %cst_61 = arith.constant 1.000000e+00 : f32
    %238 = vector.broadcast %cst_61 : f32 to vector<8x32xf32>
    %239 = arith.addf %238, %237 : vector<8x32xf32>
    %240 = arith.divf %238, %239 : vector<8x32xf32>
    %241 = vector.extract_strided_slice %228 {offsets = [0, 64], sizes = [8, 32], strides = [1, 1]} : vector<8x128xf32> to vector<8x32xf32>
    %242 = math.tanh %241 : vector<8x32xf32>
    %243 = vector.extract_strided_slice %228 {offsets = [0, 96], sizes = [8, 32], strides = [1, 1]} : vector<8x128xf32> to vector<8x32xf32>
    %244 = arith.negf %243 : vector<8x32xf32>
    %245 = math.exp %244 : vector<8x32xf32>
    %cst_62 = arith.constant 1.000000e+00 : f32
    %246 = vector.broadcast %cst_62 : f32 to vector<8x32xf32>
    %247 = arith.addf %246, %245 : vector<8x32xf32>
    %248 = arith.divf %246, %247 : vector<8x32xf32>
    %249 = arith.mulf %240, %223 : vector<8x32xf32>
    %250 = arith.mulf %234, %242 : vector<8x32xf32>
    %251 = arith.addf %249, %250 : vector<8x32xf32>
    %252 = math.tanh %251 : vector<8x32xf32>
    %253 = arith.mulf %248, %252 : vector<8x32xf32>
    %c6_i32 = arith.constant 6 : i32
    %254 = arith.addi %19, %c6_i32 : i32
    %c8_i32_63 = arith.constant 8 : i32
    %255 = arith.cmpi slt, %254, %c8_i32_63 : i32
    %256 = arith.select %255, %253, %222 : vector<8x32xf32>
    %257 = arith.select %255, %251, %223 : vector<8x32xf32>
    %258 = arith.index_cast %16 : i32 to index
    %c56 = arith.constant 56 : index
    %c0_64 = arith.constant 0 : index
    %259 = vector.load %arg8[%258, %c56, %c0_64] : memref<2x64x128xf32, #tpu.memory_space<vmem>>, vector<1x8x128xf32>
    %260 = vector.shape_cast %259 : vector<1x8x128xf32> to vector<8x128xf32>
    %cst_65 = arith.constant dense<0.000000e+00> : vector<8x128xf32>
    %261 = tpu.matmul %256, %13, %cst_65 {dimension_numbers = #tpu.dot_dimension_numbers<[1], [0], [0], [1], [0, 0, 1, 1], [], []>} : vector<8x32xf32>, vector<32x128xf32>, vector<8x128xf32> -> vector<8x128xf32>
    %262 = arith.addf %260, %261 : vector<8x128xf32>
    %263 = vector.extract_strided_slice %262 {offsets = [0, 0], sizes = [8, 32], strides = [1, 1]} : vector<8x128xf32> to vector<8x32xf32>
    %264 = arith.negf %263 : vector<8x32xf32>
    %265 = math.exp %264 : vector<8x32xf32>
    %cst_66 = arith.constant 1.000000e+00 : f32
    %266 = vector.broadcast %cst_66 : f32 to vector<8x32xf32>
    %267 = arith.addf %266, %265 : vector<8x32xf32>
    %268 = arith.divf %266, %267 : vector<8x32xf32>
    %269 = vector.extract_strided_slice %262 {offsets = [0, 32], sizes = [8, 32], strides = [1, 1]} : vector<8x128xf32> to vector<8x32xf32>
    %270 = arith.negf %269 : vector<8x32xf32>
    %271 = math.exp %270 : vector<8x32xf32>
    %cst_67 = arith.constant 1.000000e+00 : f32
    %272 = vector.broadcast %cst_67 : f32 to vector<8x32xf32>
    %273 = arith.addf %272, %271 : vector<8x32xf32>
    %274 = arith.divf %272, %273 : vector<8x32xf32>
    %275 = vector.extract_strided_slice %262 {offsets = [0, 64], sizes = [8, 32], strides = [1, 1]} : vector<8x128xf32> to vector<8x32xf32>
    %276 = math.tanh %275 : vector<8x32xf32>
    %277 = vector.extract_strided_slice %262 {offsets = [0, 96], sizes = [8, 32], strides = [1, 1]} : vector<8x128xf32> to vector<8x32xf32>
    %278 = arith.negf %277 : vector<8x32xf32>
    %279 = math.exp %278 : vector<8x32xf32>
    %cst_68 = arith.constant 1.000000e+00 : f32
    %280 = vector.broadcast %cst_68 : f32 to vector<8x32xf32>
    %281 = arith.addf %280, %279 : vector<8x32xf32>
    %282 = arith.divf %280, %281 : vector<8x32xf32>
    %283 = arith.mulf %274, %257 : vector<8x32xf32>
    %284 = arith.mulf %268, %276 : vector<8x32xf32>
    %285 = arith.addf %283, %284 : vector<8x32xf32>
    %286 = math.tanh %285 : vector<8x32xf32>
    %287 = arith.mulf %282, %286 : vector<8x32xf32>
    %c7_i32 = arith.constant 7 : i32
    %288 = arith.addi %19, %c7_i32 : i32
    %c8_i32_69 = arith.constant 8 : i32
    %289 = arith.cmpi slt, %288, %c8_i32_69 : i32
    %290 = arith.select %289, %287, %256 : vector<8x32xf32>
    %291 = arith.select %289, %285, %257 : vector<8x32xf32>
    %c1_i32_70 = arith.constant 1 : i32
    %c0_71 = arith.constant 0 : index
    %c0_72 = arith.constant 0 : index
    %292 = vector.load %arg6[%c0_71, %c0_72] : memref<8x32xf32, #tpu.memory_space<vmem>>, vector<8x32xf32>
    tpu.vector_store %arg6[%c0_71, %c0_72], %290 {strides = array<i32>} : memref<8x32xf32, #tpu.memory_space<vmem>>, vector<8x32xf32>,
    %c0_73 = arith.constant 0 : index
    %c0_74 = arith.constant 0 : index
    %293 = vector.load %arg7[%c0_73, %c0_74] : memref<8x32xf32, #tpu.memory_space<vmem>>, vector<8x32xf32>
    tpu.vector_store %arg7[%c0_73, %c0_74], %291 {strides = array<i32>} : memref<8x32xf32, #tpu.memory_space<vmem>>, vector<8x32xf32>,
    return
  }
  func.func @transform_0(%arg0: i32, %arg1: i32) -> (i32, i32, i32, i32) {
    %c0_i32 = arith.constant 0 : i32
    %c0_i32_0 = arith.constant 0 : i32
    %c0_i32_1 = arith.constant 0 : i32
    return %arg0, %arg1, %c0_i32, %c0_i32_0 : i32, i32, i32, i32
  }
  func.func @transform_1(%arg0: i32, %arg1: i32) -> (i32, i32) {
    %c0_i32 = arith.constant 0 : i32
    %c0_i32_0 = arith.constant 0 : i32
    %c0_i32_1 = arith.constant 0 : i32
    return %c0_i32, %c0_i32_0 : i32, i32
  }
  func.func @transform_2(%arg0: i32, %arg1: i32) -> (i32, i32) {
    %c0_i32 = arith.constant 0 : i32
    %c0_i32_0 = arith.constant 0 : i32
    %c0_i32_1 = arith.constant 0 : i32
    return %c0_i32, %c0_i32_0 : i32, i32
  }
  func.func @transform_3(%arg0: i32, %arg1: i32) -> (i32, i32) {
    %c0_i32 = arith.constant 0 : i32
    %c0_i32_0 = arith.constant 0 : i32
    %c0_i32_1 = arith.constant 0 : i32
    return %c0_i32, %c0_i32_0 : i32, i32
  }
  func.func @transform_4(%arg0: i32, %arg1: i32) -> (i32, i32) {
    %c0_i32 = arith.constant 0 : i32
    %c0_i32_0 = arith.constant 0 : i32
    return %arg0, %c0_i32 : i32, i32
  }
}

</mosaic_0001>

<bundles_post_ra>
// kernel: tpu_custom_call.1
= control target key start
LH: loop header
LB: loop body
LE: loop exit
PB: predicated region body
PF: predicated region fallthrough
CT: control target
= control target key end

     0   :  { %vm67_vm0 = vcmask 1042432   ;;  %vm22_vm1 = vcmask 261120   ;;  %v862_v3 = vmov 0.0   ;;  %s1064_s0 = inlined_call_operand.vmem [shape: f32[1,1,64,35], index: 0, kind: input, shape index: {}]   ;;  %s1065_s1 = inlined_call_operand.vmem [shape: f32[35,128], index: 1, kind: input, shape index: {}]   ;;  %s1066_s2 = inlined_call_operand.vmem [shape: f32[32,128], index: 2, kind: input, shape index: {}]   ;;  %s1067_s3 = inlined_call_operand.vmem [shape: f32[1,128], index: 3, kind: input, shape index: {}]   ;;  %s1068_s4 = inlined_call_operand.hbm [shape: f32[8,32], index: 4, kind: output, shape index: {}]  }
   0x1   :  { %v37_v0 = vld [vmem:[%s1065_s1 + $0x20] sm:$0x7]  ;;  %v36_v1 = vld [vmem:[%s1065_s1 + $0x18] sm:$0xff]  ;;  %v35_v2 = vld [vmem:[%s1065_s1 + $0x10] sm:$0xff]  ;;  %23 = vst.msk [vmem:[#allocation4] sm:$0xff] %vm22_vm1, %v862_v3 }
   0x2   :  { %751 = vmatpush.msk.msra.mxu1 %vm67_vm0, %v37_v0  ;;  %726 = vmatpush.msk.msra.mxu0 %vm67_vm0, %v37_v0  ;;  %24 = vst.msk [vmem:[#allocation2] sm:$0xff] %vm22_vm1, %v862_v3  ;;  %v34_v4 = vld [vmem:[%s1065_s1 + $0x8] sm:$0xff] }
   0x3   :  { %752 = vmatpush.msk.msra.mxu2 %vm67_vm0, %v37_v0  ;;  %753 = vmatpush.msk.msra.mxu3 %vm67_vm0, %v37_v0 }
   0x4   :  { %754 = vmatpush.msra.mxu1 %v36_v1  ;;  %83 = vmatpush.msra.mxu0 %v36_v1 }
   0x5   :  { %755 = vmatpush.msra.mxu2 %v36_v1  ;;  %756 = vmatpush.msra.mxu3 %v36_v1 }
   0x6   :  { %9 = vsyncpa [#allocation5], 0  ;;  %757 = vmatpush.msra.mxu1 %v35_v2  ;;  %84 = vmatpush.msra.mxu0 %v35_v2  ;;  %v33_v5 = vld [vmem:[%s1065_s1] sm:$0xff]  ;;  %vm42_vm2 = vcmask 285696   ;;  %v918_v8 = vld [vmem:[%s1066_s2 + $0x18] sm:$0xff]  ;;  %s863_s11 = smov 64  }
   0x7   :  { %758 = vmatpush.msra.mxu2 %v35_v2  ;;  %759 = vmatpush.msra.mxu3 %v35_v2  ;;  %v29_v6 = vld [vmem:[%s1064_s0 + $0x20] sm:$0xff]  ;;  %v924_v9 = vld [vmem:[%s1066_s2 + $0x10] sm:$0xff]  ;;  %v931_v10 = vld [vmem:[%s1066_s2 + $0x8] sm:$0xff]  ;;  %s864_s12 = smov 32   ;;  %s866_s24 = smov [#allocation4]  }
   0x8   :  { %760 = vmatpush.msra.mxu1 %v34_v4  ;;  %85 = vmatpush.msra.mxu0 %v34_v4  ;;  %v25_v7 = vld [vmem:[%s1064_s0] sm:$0xff]  ;;  %v124_v12 = vld [vmem:[#allocation4] sm:$0xff]  ;;  %s715_s25 = sshll.u32 %s866_s24, 4  ;;  %s717_s28 = sshll.u32 %s1068_s4, 4  ;;  %s716_s25 = int_to_ptr.vmem [resolvable:$true] %s715_s25  ;;  %s718_s28 = int_to_ptr.hbm [resolvable:$true] %s717_s28 }
   0x9   :  { %761 = vmatpush.msra.mxu2 %v34_v4  ;;  %762 = vmatpush.msra.mxu3 %v34_v4  ;;  %v939_v11 = vld [vmem:[%s1066_s2] sm:$0xff]  ;;  %v30_v41 = vld [vmem:[%s1064_s0 + $0x28] sm:$0xff] }
   0xa   :  { %763 = vmatpush.msra.mxu1 %v33_v5  ;;  %86 = vmatpush.msra.mxu0 %v33_v5  ;;  %v963_v15 = vld [vmem:[%s1067_s3] ss:$0 sm:$0xff]  ;;  %v26_v44 = vld [vmem:[%s1064_s0 + $0x8] sm:$0xff] }
   0xb   :  { %731 = vmatmul.msk.f32.vlgmr.msra.gmra.mxu1 %vm42_vm2, %v29_v6  ;;  %727 = vmatmul.msk.f32.vlgmr.msra.gmra.mxu0 %vm42_vm2, %v25_v7  ;;  %v125_v20 = vld [vmem:[#allocation2] sm:$0xff]  ;;  %v31_v7 = vld [vmem:[%s1064_s0 + $0x30] sm:$0xff] }
   0xc   :  { %144 = vmatpush.msrb.mxu1 %v918_v8  ;;  %764 = vmatpush.msra.mxu2 %v33_v5 }
   0xd   :  { %765 = vmatpush.msra.mxu3 %v33_v5  ;;  %732 = vmatmul.msk.f32.vlgmr.msra.gmra.mxu2 %vm42_vm2, %v30_v41  ;;  %v28_v41 = vld [vmem:[%s1064_s0 + $0x18] sm:$0xff] }
   0xe   :  { %221 = vmatpush.msrb.mxu2 %v918_v8  ;;  %145 = vmatpush.msrb.mxu1 %v924_v9 }
   0xf   :  { %292 = vmatpush.msrb.mxu3 %v918_v8 }
  0x10   :  { %222 = vmatpush.msrb.mxu2 %v924_v9  ;;  %146 = vmatpush.msrb.mxu1 %v931_v10 }
  0x11   :  { %293 = vmatpush.msrb.mxu3 %v924_v9 }
  0x12   :  { %223 = vmatpush.msrb.mxu2 %v931_v10  ;;  %147 = vmatpush.msrb.mxu1 %v939_v11 }
  0x13   :  { %294 = vmatpush.msrb.mxu3 %v931_v10  ;;  %735 = vmatmul.msk.f32.vlgmr.msrb.gmra.mxu1 %vm22_vm1, %v124_v12  ;;  %v32_v12 = vld [vmem:[%s1064_s0 + $0x38] sm:$0xff] }
  0x14   :  { %224 = vmatpush.msrb.mxu2 %v939_v11  ;;  %363 = vmatpush.msra.mxu1 %v918_v8 }
  0x15   :  { %295 = vmatpush.msrb.mxu3 %v939_v11  ;;  %728 = vmatmul.msk.f32.gmra.mxu0 %vm42_vm2, %v26_v44 }
  0x16   :  { %364 = vmatpush.msra.mxu1 %v924_v9  ;;  %434 = vmatpush.msra.mxu2 %v918_v8 }
  0x17   :  { %733 = vmatmul.msk.f32.vlgmr.msra.gmra.mxu3 %vm42_vm2, %v31_v7 }
  0x18   :  { %365 = vmatpush.msra.mxu1 %v931_v10  ;;  %435 = vmatpush.msra.mxu2 %v924_v9 }
  0x19   :  { %505 = vmatpush.msra.mxu3 %v918_v8 }
  0x1a   :  { %366 = vmatpush.msra.mxu1 %v939_v11  ;;  %436 = vmatpush.msra.mxu2 %v931_v10 }
  0x1b   :  { %506 = vmatpush.msra.mxu3 %v924_v9 }
  0x1c   :  { %576 = vmatpush.msrb.mxu1 %v918_v8  ;;  %437 = vmatpush.msra.mxu2 %v939_v11 }
  0x1d   :  { %507 = vmatpush.msra.mxu3 %v931_v10 }
  0x1e   :  { %577 = vmatpush.msrb.mxu1 %v924_v9 }
  0x1f   :  { %508 = vmatpush.msra.mxu3 %v939_v11 }
  0x20   :  { %578 = vmatpush.msrb.mxu1 %v931_v10  ;;  %734 = vmatmul.msk.f32.gmra.mxu3 %vm42_vm2, %v32_v12 }
  0x22   :  { %579 = vmatpush.msrb.mxu1 %v939_v11 }
  0x88   :  { %v958_v13 = vpop.f32.mrf.mxu1  ;;  %v88_v14 = vpop.f32.mrf.mxu0 }
  0x89   :  { %v89_v16 = vadd.f32 %v963_v15, %v88_v14 }
  0x90   :  { %v149_v17 = vpop.f32.mrf.mxu1  ;;  %v988_v46 = vpop.f32.mrf.mxu2 }
  0x91   :  { %v152_v18 = vadd.f32 %v149_v17, %v89_v16 }
  0x92   :  { %v91_v47 = vpop.f32.mrf.mxu0 }
  0x93   :  { %772 = vtanh.f32 %v152_v18  ;;  %v736_v21 = vmul.f32 -1.442695, %v152_v18  ;;  %v92_v48 = vadd.f32 %v963_v15, %v91_v47 }
  0x95   :  { %774 = vpow2.f32 %v736_v21 }
  0x99   :  { %v773_v19 = vpop.eup %772 }
  0x9a   :  { %179 = vrot.lane.b32.xlu0 %v773_v19, %s863_s11  ;;  %v1012_v17 = vpop.f32.mrf.mxu3 }
  0x9b   :  { %v775_v22 = vpop.eup %774 }
  0x9c   :  { %v156_v23 = vadd.f32 1.0, %v775_v22 }
  0x9e   :  { %776 = vrcp.f32 %v156_v23  ;;  %v168_v29 = vand.u32 2147483648, %v156_v23  ;;  %vm162_vm4 = vweird.f32 %v156_v23  ;;  %v166_v30 = vand.u32 2147483647, %v156_v23 }
  0xa0   :  { %v169_v32 = vor.u32 1.1754944e-38, %v168_v29  ;;  %vm167_vm6 = vcmp.eq.f32.partialorder %v166_v30, 8.507059e+37 }
  0xa2   :  { %174 = vrot.lane.b32.xlu0 %v125_v20, %s864_s12 }
  0xa4   :  { %v777_v24 = vpop.eup %776 }
  0xa5   :  { %v158_v25 = vmul.f32 %v777_v24, %v156_v23  ;;  %vm163_vm3 = vweird.f32 %v777_v24 }
  0xa6   :  { %vm164_vm5 = vmor %vm162_vm4, %vm163_vm3 }
  0xa7   :  { %v159_v26 = vsub.f32 1.0, %v158_v25 }
  0xa9   :  { %v160_v27 = vmul.f32 %v777_v24, %v159_v26 }
  0xab   :  { %v161_v28 = vadd.f32 %v777_v24, %v160_v27 }
  0xad   :  { %v165_v31 = vsel %vm164_vm5, %v777_v24, %v161_v28 }
  0xae   :  { %v170_v34 = vsel %vm167_vm6, %v169_v32, %v165_v31 }
 0x10c   :  { %v180_v33 = vpop.permute.xlu0 %179 }
 0x10d   :  { %v182_v35 = vmul.f32 %v180_v33, %v170_v34 }
 0x10f   :  { %184 = vrot.lane.b32.xlu1 %v182_v35, %s864_s12 }
 0x114   :  { %v175_v36 = vpop.permute.xlu0 %174 }
 0x115   :  { %v177_v37 = vmul.f32 %v175_v36, %v170_v34 }
 0x181   :  { %v185_v38 = vpop.permute.xlu1 %184 }
 0x182   :  { %v187_v39 = vadd.f32 %v185_v38, %v177_v37 }
 0x184   :  { %778 = vtanh.f32 %v187_v39 }
 0x18a   :  { %v779_v40 = vpop.eup %778 }
 0x18b   :  { %190 = vrot.lane.b32.xlu1 %v779_v40, %s863_s11 }
 0x1fd   :  { %v191_v42 = vpop.permute.xlu1 %190 }
 0x1fe   :  { %v193_v43 = vmul.f32 %v191_v42, %v170_v34 }
 0x200   :  { %205 = vrot.lane.b32.xlu2 %v193_v43, %s864_s12 }
 0x25a   :  { %v206_v45 = vpop.permute.xlu2 %205 }
 0x25b   :  { %737 = vmatmul.msk.f32.vlgmr.msrb.gmra.mxu2 %vm22_vm1, %v206_v45 }
 0x25c   :  { %647 = vmatpush.msrb.mxu2 %v918_v8  ;;  %v27_v8 = vld [vmem:[%s1064_s0 + $0x10] sm:$0xff]  ;;  %s865_s0 = smov 96  }
 0x25d   :  { %729 = vmatmul.msk.f32.gmra.mxu0 %vm42_vm2, %v27_v8 }
 0x25e   :  { %648 = vmatpush.msrb.mxu2 %v924_v9 }
 0x260   :  { %649 = vmatpush.msrb.mxu2 %v931_v10  ;;  %v1014_v10 = vpop.f32.mrf.mxu3 }
 0x262   :  { %650 = vmatpush.msrb.mxu2 %v939_v11 }
 0x265   :  { %730 = vmatmul.msk.f32.gmra.mxu0 %vm42_vm2, %v28_v41 }
 0x2da   :  { %v94_v11 = vpop.f32.mrf.mxu0 }
 0x2db   :  { %v95_v18 = vadd.f32 %v963_v15, %v94_v11 }
 0x2de   :  { %v226_v49 = vpop.f32.mrf.mxu2 }
 0x2df   :  { %v229_v50 = vadd.f32 %v226_v49, %v92_v48 }
 0x2e1   :  { %780 = vtanh.f32 %v229_v50  ;;  %v738_v52 = vmul.f32 -1.442695, %v229_v50 }
 0x2e2   :  { %v97_v45 = vpop.f32.mrf.mxu0 }
 0x2e3   :  { %782 = vpow2.f32 %v738_v52  ;;  %v98_v47 = vadd.f32 %v963_v15, %v97_v45 }
 0x2e7   :  { %v781_v51 = vpop.eup %780 }
 0x2e8   :  { %252 = vrot.lane.b32.xlu2 %v781_v51, %s863_s11 }
 0x2e9   :  { %v783_v53 = vpop.eup %782 }
 0x2ea   :  { %v233_v54 = vadd.f32 1.0, %v783_v53 }
 0x2ec   :  { %784 = vrcp.f32 %v233_v54  ;;  %v245_v60 = vand.u32 2147483648, %v233_v54  ;;  %vm239_vm8 = vweird.f32 %v233_v54  ;;  %v243_v61 = vand.u32 2147483647, %v233_v54 }
 0x2ee   :  { %v246_v63 = vor.u32 1.1754944e-38, %v245_v60  ;;  %vm244_vm10 = vcmp.eq.f32.partialorder %v243_v61, 8.507059e+37 }
 0x2f2   :  { %v785_v55 = vpop.eup %784 }
 0x2f3   :  { %v235_v56 = vmul.f32 %v785_v55, %v233_v54  ;;  %vm240_vm7 = vweird.f32 %v785_v55 }
 0x2f4   :  { %vm241_vm9 = vmor %vm239_vm8, %vm240_vm7 }
 0x2f5   :  { %v236_v57 = vsub.f32 1.0, %v235_v56 }
 0x2f7   :  { %v237_v58 = vmul.f32 %v785_v55, %v236_v57 }
 0x2f9   :  { %v238_v59 = vadd.f32 %v785_v55, %v237_v58 }
 0x2fb   :  { %v242_v62 = vsel %vm241_vm9, %v785_v55, %v238_v59 }
 0x2fc   :  { %v247_v1 = vsel %vm244_vm10, %v246_v63, %v242_v62 }
 0x2fd   :  { %v250_v3 = vmul.f32 %v247_v1, %v187_v39 }
 0x342   :  { %v253_v0 = vpop.permute.xlu2 %252 }
 0x343   :  { %v255_v2 = vmul.f32 %v253_v0, %v247_v1 }
 0x345   :  { %257 = vrot.lane.b32.xlu0 %v255_v2, %s864_s12 }
 0x3b7   :  { %v258_v4 = vpop.permute.xlu0 %257 }
 0x3b8   :  { %v260_v5 = vadd.f32 %v258_v4, %v250_v3 }
 0x3ba   :  { %786 = vtanh.f32 %v260_v5 }
 0x3c0   :  { %v787_v6 = vpop.eup %786 }
 0x3c1   :  { %263 = vrot.lane.b32.xlu1 %v787_v6, %s863_s11 }
 0x433   :  { %v264_v14 = vpop.permute.xlu1 %263 }
 0x434   :  { %v266_v16 = vmul.f32 %v264_v14, %v247_v1  ;;  %v101_v14 = vadd.f32 %v963_v15, %v958_v13 }
 0x436   :  { %276 = vrot.lane.b32.xlu2 %v266_v16, %s864_s12 }
 0x490   :  { %v277_v9 = vpop.permute.xlu2 %276 }
 0x491   :  { %739 = vmatmul.msk.f32.vlgmr.msrb.gmra.mxu3 %vm22_vm1, %v277_v9 }
 0x514   :  { %v297_v19 = vpop.f32.mrf.mxu3 }
 0x515   :  { %v300_v20 = vadd.f32 %v297_v19, %v95_v18 }
 0x517   :  { %788 = vtanh.f32 %v300_v20  ;;  %v740_v22 = vmul.f32 -1.442695, %v300_v20 }
 0x519   :  { %790 = vpow2.f32 %v740_v22 }
 0x51d   :  { %v789_v21 = vpop.eup %788 }
 0x51e   :  { %323 = vrot.lane.b32.xlu0 %v789_v21, %s863_s11 }
 0x51f   :  { %v791_v23 = vpop.eup %790 }
 0x520   :  { %v304_v24 = vadd.f32 1.0, %v791_v23 }
 0x522   :  { %792 = vrcp.f32 %v304_v24  ;;  %v316_v30 = vand.u32 2147483648, %v304_v24  ;;  %vm310_vm12 = vweird.f32 %v304_v24  ;;  %v314_v31 = vand.u32 2147483647, %v304_v24 }
 0x524   :  { %v317_v33 = vor.u32 1.1754944e-38, %v316_v30  ;;  %vm315_vm14 = vcmp.eq.f32.partialorder %v314_v31, 8.507059e+37 }
 0x528   :  { %v793_v25 = vpop.eup %792 }
 0x529   :  { %v306_v26 = vmul.f32 %v793_v25, %v304_v24  ;;  %vm311_vm11 = vweird.f32 %v793_v25 }
 0x52a   :  { %vm312_vm13 = vmor %vm310_vm12, %vm311_vm11 }
 0x52b   :  { %v307_v27 = vsub.f32 1.0, %v306_v26 }
 0x52d   :  { %v308_v28 = vmul.f32 %v793_v25, %v307_v27 }
 0x52f   :  { %v309_v29 = vadd.f32 %v793_v25, %v308_v28 }
 0x531   :  { %v313_v32 = vsel %vm312_vm13, %v793_v25, %v309_v29 }
 0x532   :  { %v318_v35 = vsel %vm315_vm14, %v317_v33, %v313_v32 }
 0x533   :  { %v321_v37 = vmul.f32 %v318_v35, %v260_v5 }
 0x590   :  { %v324_v34 = vpop.permute.xlu0 %323 }
 0x591   :  { %v326_v36 = vmul.f32 %v324_v34, %v318_v35 }
 0x593   :  { %328 = vrot.lane.b32.xlu1 %v326_v36, %s864_s12 }
 0x605   :  { %v329_v38 = vpop.permute.xlu1 %328 }
 0x606   :  { %v331_v39 = vadd.f32 %v329_v38, %v321_v37  ;;  %v104_v38 = vadd.f32 %v963_v15, %v988_v46 }
 0x608   :  { %794 = vtanh.f32 %v331_v39 }
 0x60e   :  { %v795_v40 = vpop.eup %794 }
 0x60f   :  { %334 = vrot.lane.b32.xlu2 %v795_v40, %s863_s11 }
 0x669   :  { %v335_v42 = vpop.permute.xlu2 %334 }
 0x66a   :  { %v337_v43 = vmul.f32 %v335_v42, %v318_v35 }
 0x66c   :  { %347 = vrot.lane.b32.xlu0 %v337_v43, %s864_s12 }
 0x6de   :  { %v348_v44 = vpop.permute.xlu0 %347 }
 0x6df   :  { %741 = vmatmul.msk.f32.vlgmr.msra.gmra.mxu1 %vm22_vm1, %v348_v44 }
 0x75c   :  { %v368_v48 = vpop.f32.mrf.mxu1 }
 0x75d   :  { %v371_v49 = vadd.f32 %v368_v48, %v98_v47 }
 0x75f   :  { %796 = vtanh.f32 %v371_v49  ;;  %v742_v51 = vmul.f32 -1.442695, %v371_v49 }
 0x761   :  { %798 = vpow2.f32 %v742_v51 }
 0x765   :  { %v797_v50 = vpop.eup %796 }
 0x766   :  { %394 = vrot.lane.b32.xlu1 %v797_v50, %s863_s11 }
 0x767   :  { %v799_v52 = vpop.eup %798 }
 0x768   :  { %v375_v53 = vadd.f32 1.0, %v799_v52 }
 0x76a   :  { %800 = vrcp.f32 %v375_v53  ;;  %v387_v59 = vand.u32 2147483648, %v375_v53  ;;  %vm381_vm0 = vweird.f32 %v375_v53  ;;  %v385_v60 = vand.u32 2147483647, %v375_v53 }
 0x76c   :  { %v388_v62 = vor.u32 1.1754944e-38, %v387_v59  ;;  %vm386_vm3 = vcmp.eq.f32.partialorder %v385_v60, 8.507059e+37 }
 0x770   :  { %v801_v54 = vpop.eup %800 }
 0x771   :  { %v377_v55 = vmul.f32 %v801_v54, %v375_v53  ;;  %vm382_vm15 = vweird.f32 %v801_v54 }
 0x772   :  { %vm383_vm2 = vmor %vm381_vm0, %vm382_vm15 }
 0x773   :  { %v378_v56 = vsub.f32 1.0, %v377_v55 }
 0x775   :  { %v379_v57 = vmul.f32 %v801_v54, %v378_v56 }
 0x777   :  { %v380_v58 = vadd.f32 %v801_v54, %v379_v57 }
 0x779   :  { %v384_v61 = vsel %vm383_vm2, %v801_v54, %v380_v58 }
 0x77a   :  { %v389_v0 = vsel %vm386_vm3, %v388_v62, %v384_v61 }
 0x77b   :  { %v392_v2 = vmul.f32 %v389_v0, %v331_v39 }
 0x7d8   :  { %v395_v63 = vpop.permute.xlu1 %394 }
 0x7d9   :  { %v397_v1 = vmul.f32 %v395_v63, %v389_v0 }
 0x7db   :  { %399 = vrot.lane.b32.xlu2 %v397_v1, %s864_s12 }
 0x835   :  { %v400_v3 = vpop.permute.xlu2 %399 }
 0x836   :  { %v402_v4 = vadd.f32 %v400_v3, %v392_v2 }
 0x838   :  { %802 = vtanh.f32 %v402_v4 }
 0x83e   :  { %v803_v5 = vpop.eup %802 }
 0x83f   :  { %405 = vrot.lane.b32.xlu0 %v803_v5, %s863_s11 }
 0x8b1   :  { %v406_v6 = vpop.permute.xlu0 %405 }
 0x8b2   :  { %v408_v7 = vmul.f32 %v406_v6, %v389_v0  ;;  %v107_v0 = vadd.f32 %v963_v15, %v1012_v17 }
 0x8b4   :  { %418 = vrot.lane.b32.xlu1 %v408_v7, %s864_s12 }
 0x926   :  { %v419_v12 = vpop.permute.xlu1 %418 }
 0x927   :  { %743 = vmatmul.msk.f32.vlgmr.msra.gmra.mxu2 %vm22_vm1, %v419_v12 }
 0x9aa   :  { %v439_v16 = vpop.f32.mrf.mxu2 }
 0x9ab   :  { %v442_v8 = vadd.f32 %v439_v16, %v101_v14 }
 0x9ad   :  { %804 = vtanh.f32 %v442_v8  ;;  %v744_v11 = vmul.f32 -1.442695, %v442_v8 }
 0x9af   :  { %806 = vpow2.f32 %v744_v11 }
 0x9b3   :  { %v805_v9 = vpop.eup %804 }
 0x9b4   :  { %465 = vrot.lane.b32.xlu2 %v805_v9, %s863_s11 }
 0x9b5   :  { %v807_v18 = vpop.eup %806 }
 0x9b6   :  { %v446_v19 = vadd.f32 1.0, %v807_v18 }
 0x9b8   :  { %808 = vrcp.f32 %v446_v19  ;;  %v458_v25 = vand.u32 2147483648, %v446_v19  ;;  %vm452_vm5 = vweird.f32 %v446_v19  ;;  %v456_v13 = vand.u32 2147483647, %v446_v19 }
 0x9ba   :  { %v459_v27 = vor.u32 1.1754944e-38, %v458_v25  ;;  %vm457_vm7 = vcmp.eq.f32.partialorder %v456_v13, 8.507059e+37 }
 0x9be   :  { %v809_v20 = vpop.eup %808 }
 0x9bf   :  { %v448_v21 = vmul.f32 %v809_v20, %v446_v19  ;;  %vm453_vm4 = vweird.f32 %v809_v20 }
 0x9c0   :  { %vm454_vm6 = vmor %vm452_vm5, %vm453_vm4 }
 0x9c1   :  { %v449_v22 = vsub.f32 1.0, %v448_v21 }
 0x9c3   :  { %v450_v23 = vmul.f32 %v809_v20, %v449_v22 }
 0x9c5   :  { %v451_v24 = vadd.f32 %v809_v20, %v450_v23 }
 0x9c7   :  { %v455_v26 = vsel %vm454_vm6, %v809_v20, %v451_v24 }
 0x9c8   :  { %v460_v29 = vsel %vm457_vm7, %v459_v27, %v455_v26 }
 0x9c9   :  { %v463_v31 = vmul.f32 %v460_v29, %v402_v4 }
 0xa0e   :  { %v466_v28 = vpop.permute.xlu2 %465 }
 0xa0f   :  { %v468_v30 = vmul.f32 %v466_v28, %v460_v29  ;;  %v110_v28 = vadd.f32 %v963_v15, %v1014_v10 }
 0xa11   :  { %470 = vrot.lane.b32.xlu0 %v468_v30, %s864_s12 }
 0xa83   :  { %v471_v32 = vpop.permute.xlu0 %470 }
 0xa84   :  { %v473_v33 = vadd.f32 %v471_v32, %v463_v31 }
 0xa86   :  { %810 = vtanh.f32 %v473_v33 }
 0xa8c   :  { %v811_v34 = vpop.eup %810 }
 0xa8d   :  { %476 = vrot.lane.b32.xlu1 %v811_v34, %s863_s11 }
 0xaff   :  { %v477_v35 = vpop.permute.xlu1 %476 }
 0xb00   :  { %v479_v36 = vmul.f32 %v477_v35, %v460_v29 }
 0xb02   :  { %489 = vrot.lane.b32.xlu2 %v479_v36, %s864_s12 }
 0xb5c   :  { %v490_v37 = vpop.permute.xlu2 %489 }
 0xb5d   :  { %745 = vmatmul.msk.f32.vlgmr.msra.gmra.mxu3 %vm22_vm1, %v490_v37 }
 0xbe0   :  { %v510_v39 = vpop.f32.mrf.mxu3 }
 0xbe1   :  { %v513_v40 = vadd.f32 %v510_v39, %v104_v38 }
 0xbe3   :  { %812 = vtanh.f32 %v513_v40  ;;  %v746_v42 = vmul.f32 -1.442695, %v513_v40 }
 0xbe5   :  { %814 = vpow2.f32 %v746_v42 }
 0xbe9   :  { %v813_v41 = vpop.eup %812 }
 0xbea   :  { %536 = vrot.lane.b32.xlu0 %v813_v41, %s863_s11 }
 0xbeb   :  { %v815_v43 = vpop.eup %814 }
 0xbec   :  { %v517_v44 = vadd.f32 1.0, %v815_v43 }
 0xbee   :  { %816 = vrcp.f32 %v517_v44  ;;  %v529_v51 = vand.u32 2147483648, %v517_v44  ;;  %vm523_vm9 = vweird.f32 %v517_v44  ;;  %v527_v46 = vand.u32 2147483647, %v517_v44 }
 0xbf0   :  { %v530_v53 = vor.u32 1.1754944e-38, %v529_v51  ;;  %vm528_vm11 = vcmp.eq.f32.partialorder %v527_v46, 8.507059e+37 }
 0xbf4   :  { %v817_v45 = vpop.eup %816 }
 0xbf5   :  { %v519_v47 = vmul.f32 %v817_v45, %v517_v44  ;;  %vm524_vm8 = vweird.f32 %v817_v45 }
 0xbf6   :  { %vm525_vm10 = vmor %vm523_vm9, %vm524_vm8 }
 0xbf7   :  { %v520_v48 = vsub.f32 1.0, %v519_v47 }
 0xbf9   :  { %v521_v49 = vmul.f32 %v817_v45, %v520_v48 }
 0xbfb   :  { %v522_v50 = vadd.f32 %v817_v45, %v521_v49 }
 0xbfd   :  { %v526_v52 = vsel %vm525_vm10, %v817_v45, %v522_v50 }
 0xbfe   :  { %v531_v55 = vsel %vm528_vm11, %v530_v53, %v526_v52 }
 0xbff   :  { %v534_v57 = vmul.f32 %v531_v55, %v473_v33 }
 0xc5c   :  { %v537_v54 = vpop.permute.xlu0 %536 }
 0xc5d   :  { %v539_v56 = vmul.f32 %v537_v54, %v531_v55 }
 0xc5f   :  { %541 = vrot.lane.b32.xlu1 %v539_v56, %s864_s12 }
 0xcd1   :  { %v542_v58 = vpop.permute.xlu1 %541 }
 0xcd2   :  { %v544_v59 = vadd.f32 %v542_v58, %v534_v57 }
 0xcd4   :  { %818 = vtanh.f32 %v544_v59 }
 0xcda   :  { %v819_v60 = vpop.eup %818 }
 0xcdb   :  { %547 = vrot.lane.b32.xlu2 %v819_v60, %s863_s11 }
 0xd35   :  { %v548_v61 = vpop.permute.xlu2 %547 }
 0xd36   :  { %v550_v62 = vmul.f32 %v548_v61, %v531_v55 }
 0xd38   :  { %560 = vrot.lane.b32.xlu0 %v550_v62, %s864_s12 }
 0xdaa   :  { %v561_v63 = vpop.permute.xlu0 %560 }
 0xdab   :  { %747 = vmatmul.msk.f32.vlgmr.msrb.gmra.mxu1 %vm22_vm1, %v561_v63 }
 0xe28   :  { %v581_v1 = vpop.f32.mrf.mxu1 }
 0xe29   :  { %v584_v2 = vadd.f32 %v581_v1, %v107_v0 }
 0xe2b   :  { %820 = vtanh.f32 %v584_v2  ;;  %v748_v4 = vmul.f32 -1.442695, %v584_v2 }
 0xe2d   :  { %822 = vpow2.f32 %v748_v4 }
 0xe31   :  { %v821_v3 = vpop.eup %820 }
 0xe32   :  { %607 = vrot.lane.b32.xlu1 %v821_v3, %s863_s11 }
 0xe33   :  { %v823_v5 = vpop.eup %822 }
 0xe34   :  { %v588_v6 = vadd.f32 1.0, %v823_v5 }
 0xe36   :  { %824 = vrcp.f32 %v588_v6  ;;  %v600_v9 = vand.u32 2147483648, %v588_v6  ;;  %vm594_vm13 = vweird.f32 %v588_v6  ;;  %v598_v17 = vand.u32 2147483647, %v588_v6 }
 0xe38   :  { %v601_v18 = vor.u32 1.1754944e-38, %v600_v9  ;;  %vm599_vm15 = vcmp.eq.f32.partialorder %v598_v17, 8.507059e+37 }
 0xe3c   :  { %v825_v7 = vpop.eup %824 }
 0xe3d   :  { %v590_v12 = vmul.f32 %v825_v7, %v588_v6  ;;  %vm595_vm12 = vweird.f32 %v825_v7 }
 0xe3e   :  { %vm596_vm14 = vmor %vm594_vm13, %vm595_vm12 }
 0xe3f   :  { %v591_v14 = vsub.f32 1.0, %v590_v12 }
 0xe41   :  { %v592_v16 = vmul.f32 %v825_v7, %v591_v14 }
 0xe43   :  { %v593_v8 = vadd.f32 %v825_v7, %v592_v16 }
 0xe45   :  { %v597_v11 = vsel %vm596_vm14, %v825_v7, %v593_v8 }
 0xe46   :  { %v602_v20 = vsel %vm599_vm15, %v601_v18, %v597_v11 }
 0xe47   :  { %v605_v22 = vmul.f32 %v602_v20, %v544_v59 }
 0xea4   :  { %v608_v19 = vpop.permute.xlu1 %607 }
 0xea5   :  { %v610_v21 = vmul.f32 %v608_v19, %v602_v20 }
 0xea7   :  { %612 = vrot.lane.b32.xlu2 %v610_v21, %s864_s12 }
 0xf01   :  { %v613_v23 = vpop.permute.xlu2 %612 }
 0xf02   :  { %v615_v24 = vadd.f32 %v613_v23, %v605_v22 }
 0xf04   :  { %826 = vtanh.f32 %v615_v24 }
 0xf0a   :  { %v827_v25 = vpop.eup %826 }
 0xf0b   :  { %618 = vrot.lane.b32.xlu0 %v827_v25, %s863_s11 }
 0xf7d   :  { %v619_v13 = vpop.permute.xlu0 %618 }
 0xf7e   :  { %v621_v26 = vmul.f32 %v619_v13, %v602_v20 }
 0xf80   :  { %631 = vrot.lane.b32.xlu1 %v621_v26, %s864_s12 }
 0xff2   :  { %v632_v27 = vpop.permute.xlu1 %631 }
 0xff3   :  { %749 = vmatmul.msk.f32.vlgmr.msrb.gmra.mxu2 %vm22_vm1, %v632_v27 }
0x1076   :  { %v652_v29 = vpop.f32.mrf.mxu2 }
0x1077   :  { %v655_v30 = vadd.f32 %v652_v29, %v110_v28 }
0x1079   :  { %828 = vtanh.f32 %v655_v30  ;;  %v750_v32 = vmul.f32 -1.442695, %v655_v30 }
0x107b   :  { %830 = vpow2.f32 %v750_v32 }
0x107f   :  { %v829_v31 = vpop.eup %828 }
0x1080   :  { %678 = vrot.lane.b32.xlu2 %v829_v31, %s863_s11 }
0x1081   :  { %v831_v33 = vpop.eup %830 }
0x1082   :  { %v659_v34 = vadd.f32 1.0, %v831_v33 }
0x1084   :  { %832 = vrcp.f32 %v659_v34  ;;  %v671_v40 = vand.u32 2147483648, %v659_v34  ;;  %vm665_vm2 = vweird.f32 %v659_v34  ;;  %v669_v15 = vand.u32 2147483647, %v659_v34 }
0x1086   :  { %v672_v41 = vor.u32 1.1754944e-38, %v671_v40  ;;  %vm670_vm4 = vcmp.eq.f32.partialorder %v669_v15, 8.507059e+37 }
0x108a   :  { %v833_v35 = vpop.eup %832 }
0x108b   :  { %v661_v36 = vmul.f32 %v833_v35, %v659_v34  ;;  %vm666_vm0 = vweird.f32 %v833_v35 }
0x108c   :  { %vm667_vm3 = vmor %vm665_vm2, %vm666_vm0 }
0x108d   :  { %v662_v37 = vsub.f32 1.0, %v661_v36 }
0x108f   :  { %v663_v38 = vmul.f32 %v833_v35, %v662_v37 }
0x1091   :  { %v664_v39 = vadd.f32 %v833_v35, %v663_v38 }
0x1093   :  { %v668_v10 = vsel %vm667_vm3, %v833_v35, %v664_v39 }
0x1094   :  { %v673_v43 = vsel %vm670_vm4, %v672_v41, %v668_v10 }
0x1095   :  { %v676_v45 = vmul.f32 %v673_v43, %v615_v24 }
0x10da   :  { %v679_v42 = vpop.permute.xlu2 %678 }
0x10db   :  { %v681_v44 = vmul.f32 %v679_v42, %v673_v43 }
0x10dd   :  { %683 = vrot.lane.b32.xlu0 %v681_v44, %s864_s12 }
0x114f   :  { %v684_v47 = vpop.permute.xlu0 %683 }
0x1150   :  { %v686_v48 = vadd.f32 %v684_v47, %v676_v45 }
0x1152   :  { %834 = vtanh.f32 %v686_v48  ;;  %706 = vrot.lane.b32.xlu0 %v686_v48, %s865_s0 }
0x1158   :  { %v835_v49 = vpop.eup %834 }
0x1159   :  { %689 = vrot.lane.b32.xlu1 %v835_v49, %s863_s11 }
0x11c4   :  { %v707_v50 = vpop.permute.xlu0 %706 }
0x11c5   :  { %709 = vst.msk [vmem:[#allocation2] sm:$0xff] %vm22_vm1, %v707_v50 }
0x11cb   :  { %v690_v51 = vpop.permute.xlu1 %689 }
0x11cc   :  { %v692_v46 = vmul.f32 %v690_v51, %v673_v43 }
0x11ce   :  { %701 = vrot.lane.b32.xlu2 %v692_v46, %s864_s12 }
0x1228   :  { %v702_v52 = vpop.permute.xlu2 %701 }
0x1229   :  { %704 = vst.msk [vmem:[#allocation4] sm:$0xff] %vm22_vm1, %v702_v52 }
0x122a   :  { %720 = dma.vmem_to_hbm [thread:$0]  %s716_s25, 128, %s718_s28, [#allocation5]  }
0x122b   :  { %860 = dma.done.wait [#allocation5], 128  }
0x122c   :  { %861 = vsyncadd [#allocation5], 4294967168 }
0x122d   :  { %725 = vsyncpa [#allocation5], 1 }

</bundles_post_ra>
